<compile_context>
chip_gen: v7x
topology: tpu7x:2x2x1
jax: 0.10.0
libtpu: 0.0.40
codegen_flags: <defaults>
</compile_context>

<pallas_src>
import functools

import jax
import jax.numpy as jnp
from jax.experimental import pallas as pl
from jax.experimental.pallas import tpu as pltpu

BN_EPS = 1e-5
LEAKY_SLOPE = 0.1

BLOCK_COUNTS = (1, 2, 8, 8, 4)
BLOCK_CHANNELS = (64, 128, 256, 512, 1024)
OUT_STAGES = (3, 4, 5)

VMEM_LIMIT = 32 * 1024 * 1024  # bytes; well under physical VMEM on v5e/v6e/v7x


def _round_up(x, m):
    return (x + m - 1) // m * m


def _pick_tile(padded, candidates=(512, 256, 128)):
    """Largest candidate tile that divides `padded` (padded is a multiple of 128)."""
    for c in candidates:
        if padded % c == 0:
            return c
    return 128


# ----------------------------- Pallas kernels -----------------------------

def _matmul_stats_kernel(a_ref, b_ref, y_ref, psum_ref, pssq_ref, acc_ref):
    """bf16 x bf16 -> f32 MXU matmul with fused per-channel sum / sum-of-squares
    partials emitted in the last-K epilogue (one (1, tn) partial per (i, j) tile)."""
    @pl.when(pl.program_id(2) == 0)
    def _():
        acc_ref[...] = jnp.zeros_like(acc_ref)

    acc_ref[...] += jnp.dot(a_ref[...], b_ref[...],
                            preferred_element_type=jnp.float32)

    @pl.when(pl.program_id(2) == pl.num_programs(2) - 1)
    def _():
        acc = acc_ref[...]
        y_ref[...] = acc.astype(y_ref.dtype)
        tn = acc.shape[1]
        psum_ref[...] = jnp.sum(acc, axis=0, keepdims=True).reshape(1, 1, tn)
        pssq_ref[...] = jnp.sum(acc * acc, axis=0, keepdims=True).reshape(1, 1, tn)


def _matmul_stats(a, b, tm, tn, tk):
    """a: [Mp, Kp] bf16, b: [Kp, Np] bf16 (tile-aligned).
    Returns y [Mp, Np] bf16 and per-M-tile column partial sums/ssq [gm, 1, Np] f32."""
    Mp, Kp = a.shape
    _, Np = b.shape
    gm, gn, gk = Mp // tm, Np // tn, Kp // tk
    return pl.pallas_call(
        _matmul_stats_kernel,
        out_shape=(jax.ShapeDtypeStruct((Mp, Np), jnp.bfloat16),
                   jax.ShapeDtypeStruct((gm, 1, Np), jnp.float32),
                   jax.ShapeDtypeStruct((gm, 1, Np), jnp.float32)),
        grid_spec=pltpu.PrefetchScalarGridSpec(
            num_scalar_prefetch=0,
            grid=(gm, gn, gk),
            in_specs=[pl.BlockSpec((tm, tk), lambda i, j, k: (i, k)),
                      pl.BlockSpec((tk, tn), lambda i, j, k: (k, j))],
            out_specs=(pl.BlockSpec((tm, tn), lambda i, j, k: (i, j)),
                       pl.BlockSpec((1, 1, tn), lambda i, j, k: (i, 0, j)),
                       pl.BlockSpec((1, 1, tn), lambda i, j, k: (i, 0, j))),
            scratch_shapes=[pltpu.VMEM((tm, tn), jnp.float32)]),
        compiler_params=pltpu.CompilerParams(
            dimension_semantics=("parallel", "parallel", "arbitrary"),
            vmem_limit_bytes=VMEM_LIMIT),
    )(a, b)


def _bn_act_kernel(y_ref, scale_ref, shift_ref, o_ref):
    # Folded BN affine: z = y * scale + shift (f32), LeakyReLU(0.1), bf16 out.
    z = y_ref[...].astype(jnp.float32) * scale_ref[...] + shift_ref[...]
    o_ref[...] = jnp.where(z >= 0, z, LEAKY_SLOPE * z).astype(o_ref.dtype)


def _bn_act_res_kernel(y_ref, scale_ref, shift_ref, r_ref, o_ref):
    z = y_ref[...].astype(jnp.float32) * scale_ref[...] + shift_ref[...]
    a = jnp.where(z >= 0, z, LEAKY_SLOPE * z)
    o_ref[...] = (a + r_ref[...].astype(jnp.float32)).astype(o_ref.dtype)


# ------------------------- ConvBlock (Conv+BN+Act) -------------------------

@functools.partial(jax.jit, static_argnames=("stride", "padding", "has_residual"))
def _conv_block_apply(x, w, gamma, beta, residual, *, stride, padding, has_residual):
    """x: [N, H, W, Cin] (any float dtype), w: [kh, kw, Cin, Cout] f32 (HWIO).
    Returns NHWC bf16 output of Conv -> BN(batch stats) -> LeakyReLU (+ residual)."""
    N, H, W, Cin = x.shape
    kh, kw, _, Cout = w.shape
    Ho = (H + 2 * padding - kh) // stride + 1
    Wo = (W + 2 * padding - kw) // stride + 1
    M = N * Ho * Wo
    K = kh * kw * Cin

    x = x.astype(jnp.bfloat16)

    if kh == 1 and kw == 1 and stride == 1 and padding == 0:
        # 1x1 conv: no im2col needed.
        a = x.reshape(M, Cin)
    else:
        xp = (jnp.pad(x, ((0, 0), (padding, padding), (padding, padding), (0, 0)))
              if padding else x)
        # im2col glue, already in bf16; ordering (kh, kw, Cin) matches w.reshape below.
        patches = []
        for di in range(kh):
            for dj in range(kw):
                patches.append(
                    xp[:, di:di + stride * Ho:stride, dj:dj + stride * Wo:stride, :])
        a = jnp.stack(patches, axis=3).reshape(M, K)
    b = w.reshape(K, Cout).astype(jnp.bfloat16)

    Mp = _round_up(M, 128)
    Kp = _round_up(K, 128)
    Cp = _round_up(Cout, 128)
    tm = 256 if Mp % 256 == 0 else 128
    tn = 256 if Cp % 256 == 0 else 128
    tk = _pick_tile(Kp)

    if (Mp, Kp) != (M, K):
        a = jnp.pad(a, ((0, Mp - M), (0, Kp - K)))
    if (Kp, Cp) != (K, Cout):
        b = jnp.pad(b, ((0, Kp - K), (0, Cp - Cout)))

    # Convolution on the MXU + fused per-channel stats partials.
    y, psum, pssq = _matmul_stats(a, b, tm, tn, tk)

    # Train-mode BatchNorm statistics over (N, Ho, Wo) per channel.
    # Padded A rows are exactly zero, so they contribute nothing; divide by true M.
    s = jnp.sum(psum, axis=(0, 1))            # (Cp,)
    ss = jnp.sum(pssq, axis=(0, 1))           # (Cp,)
    mean = s / M
    var = jnp.maximum(ss / M - mean * mean, 0.0)   # biased variance (F.batch_norm)
    invstd = jax.lax.rsqrt(var + BN_EPS)
    gamma_p = jnp.pad(gamma, (0, Cp - Cout)) if Cp != Cout else gamma
    beta_p = jnp.pad(beta, (0, Cp - Cout)) if Cp != Cout else beta
    scale = (gamma_p * invstd).reshape(1, Cp)
    shift = (beta_p - mean * gamma_p * invstd).reshape(1, Cp)

    rb = _pick_tile(Mp)                        # 512-row blocks where possible
    grid = (Mp // rb,)
    mat_spec = pl.BlockSpec((rb, Cp), lambda i: (i, 0))
    vec_spec = pl.BlockSpec((1, Cp), lambda i: (0, 0))
    cparams = pltpu.CompilerParams(dimension_semantics=("parallel",),
                                   vmem_limit_bytes=VMEM_LIMIT)

    if has_residual:
        r = residual.astype(jnp.bfloat16).reshape(M, Cout)
        if (Mp, Cp) != (M, Cout):
            r = jnp.pad(r, ((0, Mp - M), (0, Cp - Cout)))
        out = pl.pallas_call(
            _bn_act_res_kernel,
            out_shape=jax.ShapeDtypeStruct((Mp, Cp), jnp.bfloat16),
            grid_spec=pltpu.PrefetchScalarGridSpec(
                num_scalar_prefetch=0, grid=grid,
                in_specs=[mat_spec, vec_spec, vec_spec, mat_spec],
                out_specs=mat_spec),
            compiler_params=cparams,
        )(y, scale, shift, r)
    else:
        out = pl.pallas_call(
            _bn_act_kernel,
            out_shape=jax.ShapeDtypeStruct((Mp, Cp), jnp.bfloat16),
            grid_spec=pltpu.PrefetchScalarGridSpec(
                num_scalar_prefetch=0, grid=grid,
                in_specs=[mat_spec, vec_spec, vec_spec],
                out_specs=mat_spec),
            compiler_params=cparams,
        )(y, scale, shift)

    if (Mp, Cp) != (M, Cout):
        out = out[:M, :Cout]
    return out.reshape(N, Ho, Wo, Cout)


# --------------------------- parameter construction ---------------------------

def _init_conv_block(key, cin, cout, k):
    kw_, kg, kb = jax.random.split(key, 3)
    w = jax.random.normal(kw_, (k, k, cin, cout), jnp.float32) / jnp.sqrt(float(k * k * cin))
    gamma = 1.0 + 0.1 * jax.random.normal(kg, (cout,), jnp.float32)
    beta = 0.1 * jax.random.normal(kb, (cout,), jnp.float32)
    return {"w": w, "gamma": gamma, "beta": beta}


def init_darknet(key):
    keys = jax.random.split(key, 1 + len(BLOCK_COUNTS))
    params = {"conv1": _init_conv_block(keys[0], 3, 32, 3), "stages": []}
    for i, (bc, ch) in enumerate(zip(BLOCK_COUNTS, BLOCK_CHANNELS)):
        skeys = jax.random.split(keys[i + 1], 1 + 2 * bc)
        stage = {"downsample": _init_conv_block(skeys[0], ch // 2, ch, 3), "res": []}
        for b in range(bc):
            stage["res"].append({
                "conv1": _init_conv_block(skeys[1 + 2 * b], ch, ch // 2, 1),
                "conv2": _init_conv_block(skeys[2 + 2 * b], ch // 2, ch, 3),
            })
        params["stages"].append(stage)
    return params


# --------------------------------- forward ---------------------------------

def darknet_forward(params, x_nchw):
    x = jnp.transpose(x_nchw, (0, 2, 3, 1)).astype(jnp.float32)   # NCHW -> NHWC

    cb = params["conv1"]
    x = _conv_block_apply(x, cb["w"], cb["gamma"], cb["beta"], None,
                          stride=1, padding=1, has_residual=False)

    outs = []
    for i, stage in enumerate(params["stages"]):
        ds = stage["downsample"]
        x = _conv_block_apply(x, ds["w"], ds["gamma"], ds["beta"], None,
                              stride=2, padding=1, has_residual=False)
        for res in stage["res"]:
            c1, c2 = res["conv1"], res["conv2"]
            h = _conv_block_apply(x, c1["w"], c1["gamma"], c1["beta"], None,
                                  stride=1, padding=0, has_residual=False)
            # conv2 output + residual (added after activation, as in ResBlock.forward)
            x = _conv_block_apply(h, c2["w"], c2["gamma"], c2["beta"], x,
                                  stride=1, padding=1, has_residual=True)
        if (i + 1) in OUT_STAGES:
            outs.append(jnp.transpose(x, (0, 3, 1, 2)).astype(jnp.float32))  # NCHW f32
    return tuple(outs)


if __name__ == "__main__":
    key = jax.random.PRNGKey(0)
    pkey, xkey = jax.random.split(key)
    params = init_darknet(pkey)

    # PyTorch-style NCHW input: batch=2, 3 channels, 64x64 spatial.
    x = jax.random.normal(xkey, (2, 3, 64, 64), jnp.float32)

    outs = darknet_forward(params, x)
    outs = jax.block_until_ready(outs)

    expected = [(2, 256, 8, 8), (2, 512, 4, 4), (2, 1024, 2, 2)]
    assert [tuple(o.shape) for o in outs] == expected, [o.shape for o in outs]
    assert all(bool(jnp.all(jnp.isfinite(o))) for o in outs)
    print("KERNEL_OK")
</pallas_src>

<mosaic_0001>
module attributes {stable_mosaic.version = 11 : i64} {
  func.func @_matmul_stats_kernel(%arg0: i32, %arg1: i32, %arg2: i32, %arg3: memref<256x128xbf16, #tpu.memory_space<vmem>>, %arg4: memref<128x128xbf16, #tpu.memory_space<vmem>>, %arg5: memref<256x128xbf16, #tpu.memory_space<vmem>>, %arg6: memref<1x1x128xf32, #tpu.memory_space<vmem>>, %arg7: memref<1x1x128xf32, #tpu.memory_space<vmem>>, %arg8: memref<256x128xf32, #tpu.memory_space<vmem>>) attributes {dimension_semantics = [#tpu.dimension_semantics<parallel>, #tpu.dimension_semantics<parallel>, #tpu.dimension_semantics<arbitrary>], iteration_bounds = array<i64: 32, 1, 1>, scalar_prefetch = 0 : i64, scratch_operands = 1 : i64, tpu.core_type = #tpu.core_type<tc>, window_params = [{transform_indices = @transform_0, window_bounds = array<i64: 256, 128>}, {transform_indices = @transform_1, window_bounds = array<i64: 128, 128>}, {transform_indices = @transform_2, window_bounds = array<i64: 256, 128>}, {transform_indices = @transform_3, window_bounds = array<i64: 1, 1, 128>}, {transform_indices = @transform_4, window_bounds = array<i64: 1, 1, 128>}]} {
    %c0_i32 = arith.constant 0 : i32
    %0 = arith.cmpi eq, %arg2, %c0_i32 : i32
    %1 = arith.extui %0 : i1 to i32
    %c0_i32_0 = arith.constant 0 : i32
    %2 = arith.cmpi ne, %1, %c0_i32_0 : i32
    scf.if %2 {
      %cst_10 = arith.constant 0.000000e+00 : f32
      %12 = vector.broadcast %cst_10 : f32 to vector<256x128xf32>
      %c0_11 = arith.constant 0 : index
      %c0_12 = arith.constant 0 : index
      %13 = vector.load %arg8[%c0_11, %c0_12] : memref<256x128xf32, #tpu.memory_space<vmem>>, vector<256x128xf32>
      tpu.vector_store %arg8[%c0_11, %c0_12], %12 {strides = array<i32>} : memref<256x128xf32, #tpu.memory_space<vmem>>, vector<256x128xf32>,
    } else {
    }
    %c0 = arith.constant 0 : index
    %c0_1 = arith.constant 0 : index
    %3 = vector.load %arg8[%c0, %c0_1] : memref<256x128xf32, #tpu.memory_space<vmem>>, vector<256x128xf32>
    %c0_2 = arith.constant 0 : index
    %c0_3 = arith.constant 0 : index
    %4 = vector.load %arg3[%c0_2, %c0_3] : memref<256x128xbf16, #tpu.memory_space<vmem>>, vector<256x128xbf16>
    %c0_4 = arith.constant 0 : index
    %c0_5 = arith.constant 0 : index
    %5 = vector.load %arg4[%c0_4, %c0_5] : memref<128x128xbf16, #tpu.memory_space<vmem>>, vector<128x128xbf16>
    %cst = arith.constant dense<0.000000e+00> : vector<256x128xf32>
    %6 = tpu.matmul %4, %5, %cst {dimension_numbers = #tpu.dot_dimension_numbers<[1], [0], [0], [1], [0, 0, 1, 1], [], []>} : vector<256x128xbf16>, vector<128x128xbf16>, vector<256x128xf32> -> vector<256x128xf32>
    %7 = arith.addf %3, %6 : vector<256x128xf32>
    %c0_6 = arith.constant 0 : index
    %c0_7 = arith.constant 0 : index
    %8 = vector.load %arg8[%c0_6, %c0_7] : memref<256x128xf32, #tpu.memory_space<vmem>>, vector<256x128xf32>
    tpu.vector_store %arg8[%c0_6, %c0_7], %7 {strides = array<i32>} : memref<256x128xf32, #tpu.memory_space<vmem>>, vector<256x128xf32>,
    %c0_i32_8 = arith.constant 0 : i32
    %9 = arith.cmpi eq, %arg2, %c0_i32_8 : i32
    %10 = arith.extui %9 : i1 to i32
    %c0_i32_9 = arith.constant 0 : i32
    %11 = arith.cmpi ne, %10, %c0_i32_9 : i32
    scf.if %11 {
      %c0_10 = arith.constant 0 : index
      %c0_11 = arith.constant 0 : index
      %12 = vector.load %arg8[%c0_10, %c0_11] : memref<256x128xf32, #tpu.memory_space<vmem>>, vector<256x128xf32>
      %13 = arith.truncf %12 : vector<256x128xf32> to vector<256x128xbf16>
      %c0_12 = arith.constant 0 : index
      %c0_13 = arith.constant 0 : index
      %14 = vector.load %arg5[%c0_12, %c0_13] : memref<256x128xbf16, #tpu.memory_space<vmem>>, vector<256x128xbf16>
      tpu.vector_store %arg5[%c0_12, %c0_13], %13 {strides = array<i32>} : memref<256x128xbf16, #tpu.memory_space<vmem>>, vector<256x128xbf16>,
      %cst_14 = arith.constant dense<0.000000e+00> : vector<128xf32>
      %15 = vector.multi_reduction <add>, %12, %cst_14 [0] : vector<256x128xf32> to vector<128xf32>
      %16 = vector.shape_cast %15 : vector<128xf32> to vector<1x128xf32>
      %17 = vector.shape_cast %16 : vector<1x128xf32> to vector<1x1x128xf32>
      %c0_15 = arith.constant 0 : index
      %c0_16 = arith.constant 0 : index
      %c0_17 = arith.constant 0 : index
      %18 = vector.load %arg6[%c0_15, %c0_16, %c0_17] : memref<1x1x128xf32, #tpu.memory_space<vmem>>, vector<1x1x128xf32>
      tpu.vector_store %arg6[%c0_15, %c0_16, %c0_17], %17 {strides = array<i32>} : memref<1x1x128xf32, #tpu.memory_space<vmem>>, vector<1x1x128xf32>,
      %19 = arith.mulf %12, %12 : vector<256x128xf32>
      %cst_18 = arith.constant dense<0.000000e+00> : vector<128xf32>
      %20 = vector.multi_reduction <add>, %19, %cst_18 [0] : vector<256x128xf32> to vector<128xf32>
      %21 = vector.shape_cast %20 : vector<128xf32> to vector<1x128xf32>
      %22 = vector.shape_cast %21 : vector<1x128xf32> to vector<1x1x128xf32>
      %c0_19 = arith.constant 0 : index
      %c0_20 = arith.constant 0 : index
      %c0_21 = arith.constant 0 : index
      %23 = vector.load %arg7[%c0_19, %c0_20, %c0_21] : memref<1x1x128xf32, #tpu.memory_space<vmem>>, vector<1x1x128xf32>
      tpu.vector_store %arg7[%c0_19, %c0_20, %c0_21], %22 {strides = array<i32>} : memref<1x1x128xf32, #tpu.memory_space<vmem>>, vector<1x1x128xf32>,
    } else {
    }
    return
  }
  func.func @transform_0(%arg0: i32, %arg1: i32, %arg2: i32) -> (i32, i32) {
    %c0_i32 = arith.constant 0 : i32
    return %arg0, %arg2 : i32, i32
  }
  func.func @transform_1(%arg0: i32, %arg1: i32, %arg2: i32) -> (i32, i32) {
    %c0_i32 = arith.constant 0 : i32
    return %arg2, %arg1 : i32, i32
  }
  func.func @transform_2(%arg0: i32, %arg1: i32, %arg2: i32) -> (i32, i32) {
    %c0_i32 = arith.constant 0 : i32
    return %arg0, %arg1 : i32, i32
  }
  func.func @transform_3(%arg0: i32, %arg1: i32, %arg2: i32) -> (i32, i32, i32) {
    %c0_i32 = arith.constant 0 : i32
    %c0_i32_0 = arith.constant 0 : i32
    return %arg0, %c0_i32, %arg1 : i32, i32, i32
  }
  func.func @transform_4(%arg0: i32, %arg1: i32, %arg2: i32) -> (i32, i32, i32) {
    %c0_i32 = arith.constant 0 : i32
    %c0_i32_0 = arith.constant 0 : i32
    return %arg0, %c0_i32, %arg1 : i32, i32, i32
  }
}

module attributes {stable_mosaic.version = 11 : i64} {
  func.func @_bn_act_kernel(%arg0: i32, %arg1: memref<512x128xbf16, #tpu.memory_space<vmem>>, %arg2: memref<1x128xf32, #tpu.memory_space<vmem>>, %arg3: memref<1x128xf32, #tpu.memory_space<vmem>>, %arg4: memref<512x128xbf16, #tpu.memory_space<vmem>>) attributes {dimension_semantics = [#tpu.dimension_semantics<parallel>], iteration_bounds = array<i64: 16>, scalar_prefetch = 0 : i64, scratch_operands = 0 : i64, tpu.core_type = #tpu.core_type<tc>, window_params = [{transform_indices = @transform_0, window_bounds = array<i64: 512, 128>}, {pipeline_mode = #tpu.pipeline_mode<synchronous>, transform_indices = @transform_1, window_bounds = array<i64: 1, 128>}, {pipeline_mode = #tpu.pipeline_mode<synchronous>, transform_indices = @transform_2, window_bounds = array<i64: 1, 128>}, {transform_indices = @transform_3, window_bounds = array<i64: 512, 128>}]} {
    %c0 = arith.constant 0 : index
    %c0_0 = arith.constant 0 : index
    %0 = vector.load %arg1[%c0, %c0_0] : memref<512x128xbf16, #tpu.memory_space<vmem>>, vector<512x128xbf16>
    %1 = arith.extf %0 : vector<512x128xbf16> to vector<512x128xf32>
    %c0_1 = arith.constant 0 : index
    %c0_2 = arith.constant 0 : index
    %2 = vector.load %arg2[%c0_1, %c0_2] : memref<1x128xf32, #tpu.memory_space<vmem>>, vector<1x128xf32>
    %3 = vector.broadcast %2 : vector<1x128xf32> to vector<512x128xf32>
    %4 = arith.mulf %1, %3 : vector<512x128xf32>
    %c0_3 = arith.constant 0 : index
    %c0_4 = arith.constant 0 : index
    %5 = vector.load %arg3[%c0_3, %c0_4] : memref<1x128xf32, #tpu.memory_space<vmem>>, vector<1x128xf32>
    %6 = vector.broadcast %5 : vector<1x128xf32> to vector<512x128xf32>
    %7 = arith.addf %4, %6 : vector<512x128xf32>
    %cst = arith.constant 0.000000e+00 : f32
    %8 = vector.broadcast %cst : f32 to vector<512x128xf32>
    %9 = arith.cmpf oge, %7, %8 : vector<512x128xf32>
    %cst_5 = arith.constant 1.000000e-01 : f32
    %10 = vector.broadcast %cst_5 : f32 to vector<512x128xf32>
    %11 = arith.mulf %10, %7 : vector<512x128xf32>
    %12 = arith.select %9, %7, %11 : vector<512x128xi1>, vector<512x128xf32>
    %13 = arith.truncf %12 : vector<512x128xf32> to vector<512x128xbf16>
    %c0_6 = arith.constant 0 : index
    %c0_7 = arith.constant 0 : index
    %14 = vector.load %arg4[%c0_6, %c0_7] : memref<512x128xbf16, #tpu.memory_space<vmem>>, vector<512x128xbf16>
    tpu.vector_store %arg4[%c0_6, %c0_7], %13 {strides = array<i32>} : memref<512x128xbf16, #tpu.memory_space<vmem>>, vector<512x128xbf16>,
    return
  }
  func.func @transform_0(%arg0: i32) -> (i32, i32) {
    %c0_i32 = arith.constant 0 : i32
    %c0_i32_0 = arith.constant 0 : i32
    return %arg0, %c0_i32 : i32, i32
  }
  func.func @transform_1(%arg0: i32) -> (i32, i32) {
    %c0_i32 = arith.constant 0 : i32
    %c0_i32_0 = arith.constant 0 : i32
    %c0_i32_1 = arith.constant 0 : i32
    return %c0_i32, %c0_i32_0 : i32, i32
  }
  func.func @transform_2(%arg0: i32) -> (i32, i32) {
    %c0_i32 = arith.constant 0 : i32
    %c0_i32_0 = arith.constant 0 : i32
    %c0_i32_1 = arith.constant 0 : i32
    return %c0_i32, %c0_i32_0 : i32, i32
  }
  func.func @transform_3(%arg0: i32) -> (i32, i32) {
    %c0_i32 = arith.constant 0 : i32
    %c0_i32_0 = arith.constant 0 : i32
    return %arg0, %c0_i32 : i32, i32
  }
}

</mosaic_0001>

<bundles_post_ra>
// kernel: _conv_block_apply.2
= control target key start
LH: loop header
LB: loop body
LE: loop exit
PB: predicated region body
PF: predicated region fallthrough
CT: control target
= control target key end

     0   :  { %s1643_s15 = smov 0   ;;  %s1645_s16 = smov 0   ;;  %s1838_s0 = inlined_call_operand.vmem [shape: bf16[8192,128], index: 0, kind: input, shape index: {}]   ;;  %s1839_s1 = inlined_call_operand.vmem [shape: bf16[128,128], index: 1, kind: input, shape index: {}]   ;;  %s1840_s2 = inlined_call_operand.vmem [shape: bf16[8192,128], index: 2, kind: output, shape index: {0}]   ;;  %s1841_s3 = inlined_call_operand.vmem [shape: f32[32,1,128], index: 3, kind: output, shape index: {1}]   ;;  %s1842_s4 = inlined_call_operand.vmem [shape: f32[32,1,128], index: 4, kind: output, shape index: {2}]  }
   0x1   :  { %s1647_s17 = smov 0  }
   0x2 LB: > { %s34_s18 = sadd.s32 1, %s1612_s16  ;;  %p1268_p0 = scmp.ge.s32.totalorder %s1616_s17, 1  ;;  %s1616_s17 = sphi %s1647_s17, %s15_s17   ;;  %s1612_s16 = sphi %s1645_s16, %s1844_s16   ;;  %s1608_s15 = sphi %s1643_s15, %s1843_s15  }
   0x3   : > { %p36_p1 = scmp.ge.s32.totalorder %s34_s18, 32  ;;  %p214_p2 = scmp.lt.s32.totalorder %s1616_s17, 33 }
   0x5   : > { %s1846_s18 = smov (%p36_p1, %s34_s18), 0  ;;  %p215_p3 = pnand %p1268_p0, %p214_p2 }
   0x6   : > { %v1570_v0 = vld [vmem:[%s1839_s1] sm:$0xff] (!%p215_p3)   ;;  %s1269_s21 = sshll.u32 (!%p215_p3), %s1608_s15, 5  ;;  %v1571_v1 = vld [vmem:[%s1839_s1 + $0x8] sm:$0xff] (!%p215_p3)   ;;  %v1572_v2 = vld [vmem:[%s1839_s1 + $0x10] sm:$0xff] (!%p215_p3)   ;;  %p293_p5 = scmp.lt.s32.totalorder (!%p215_p3), %s1608_s15, 31 }
   0x7   : > { %218 = sbr.rel (%p215_p3) target bundleno = 331 (0x14b), region = 28  ;;  %p267_p4 = scmp.lt.s32.totalorder (!%p215_p3), %s1269_s21, 1023  ;;  %1482 = vmatprep.subr.bf16.mxu0 (!%p215_p3), %v1570_v0  ;;  %1530 = vmatprep.subr.bf16.mxu1 (!%p215_p3), %v1570_v0  ;;  %v1573_v3 = vld [vmem:[%s1839_s1 + $0x18] sm:$0xff] (!%p215_p3)   ;;  %v1574_v5 = vld [vmem:[%s1839_s1 + $0x20] sm:$0xff] (!%p215_p3)   ;;  %v1575_v6 = vld [vmem:[%s1839_s1 + $0x28] sm:$0xff] (!%p215_p3)  }
   0x8   : > { %1483 = vmatpush3.bf16.msra.mxu0 (!%p215_p3), %v1570_v0  ;;  %1538 = vmatpush3.bf16.msra.mxu1 (!%p215_p3), %v1570_v0  ;;  %v1576_v8 = vld [vmem:[%s1839_s1 + $0x30] sm:$0xff] (!%p215_p3)   ;;  %v1577_v9 = vld [vmem:[%s1839_s1 + $0x38] sm:$0xff] (!%p215_p3)  }
   0x9   : > { %1484 = vmatprep.subr.bf16.mxu0 (!%p215_p3), %v1571_v1  ;;  %1531 = vmatprep.subr.bf16.mxu1 (!%p215_p3), %v1571_v1 }
   0xc   : > { %1485 = vmatpush3.bf16.msra.mxu0 (!%p215_p3), %v1571_v1  ;;  %1539 = vmatpush3.bf16.msra.mxu1 (!%p215_p3), %v1571_v1 }
   0xd   : > { %1486 = vmatprep.subr.bf16.mxu0 (!%p215_p3), %v1572_v2  ;;  %1532 = vmatprep.subr.bf16.mxu1 (!%p215_p3), %v1572_v2 }
   0xe   : > { %s1848_s21 = smov (!%p267_p4, %s1269_s21), 1023  ;;  %s1850_s15 = smov (!%p293_p5, %s1608_s15), 31 }
   0xf   : > { %s1270_s26 = sshll.u32 %s1848_s21, 2  ;;  %s298_s23 = scalar_lea.vmem %s1841_s3, %s1850_s15 }
  0x10   : > { %s1681_s29 = scalar_lea.vmem %s1838_s0, %s1270_s26  ;;  %1487 = vmatpush3.bf16.msra.mxu0 %v1572_v2  ;;  %1540 = vmatpush3.bf16.msra.mxu1 %v1572_v2  ;;  %s1723_s20 = scalar_lea.vmem %s1840_s2, %s1270_s26 }
  0x11   : > { %v1578_v4 = vld [vmem:[%s1681_s29] sm:$0xff]   ;;  %1488 = vmatprep.subr.bf16.mxu0 %v1573_v3  ;;  %1533 = vmatprep.subr.bf16.mxu1 %v1573_v3  ;;  %v1579_v10 = vld [vmem:[%s1681_s29 + $0x8] sm:$0xff]   ;;  %v1580_v12 = vld [vmem:[%s1681_s29 + $0x10] sm:$0xff]   ;;  %s304_s26 = scalar_lea.vmem %s1842_s4, %s1850_s15 }
  0x12   : > { %1498 = vmatprep.mubr.bf16.mxu0 %v1578_v4  ;;  %v1586_v7 = vld [vmem:[%s1681_s29 + $0x40] sm:$0xff]   ;;  %v1587_v11 = vld [vmem:[%s1681_s29 + $0x48] sm:$0xff]   ;;  %v1588_v13 = vld [vmem:[%s1681_s29 + $0x50] sm:$0xff]  }
  0x13   : > { %1514 = vmatprep.mubr.bf16.mxu1 %v1586_v7  ;;  %v1581_v14 = vld [vmem:[%s1681_s29 + $0x18] sm:$0xff]   ;;  %v1582_v16 = vld [vmem:[%s1681_s29 + $0x20] sm:$0xff]   ;;  %v1583_v18 = vld [vmem:[%s1681_s29 + $0x28] sm:$0xff]  }
  0x14   : > { %1489 = vmatpush3.bf16.msra.mxu0 %v1573_v3  ;;  %1541 = vmatpush3.bf16.msra.mxu1 %v1573_v3  ;;  %v1589_v15 = vld [vmem:[%s1681_s29 + $0x58] sm:$0xff]   ;;  %v1590_v17 = vld [vmem:[%s1681_s29 + $0x60] sm:$0xff]   ;;  %v1591_v19 = vld [vmem:[%s1681_s29 + $0x68] sm:$0xff]  }
  0x15   : > { %1490 = vmatprep.subr.bf16.mxu0 %v1574_v5  ;;  %1534 = vmatprep.subr.bf16.mxu1 %v1574_v5  ;;  %v1584_v20 = vld [vmem:[%s1681_s29 + $0x30] sm:$0xff]   ;;  %v1585_v22 = vld [vmem:[%s1681_s29 + $0x38] sm:$0xff]  }
  0x16   : > { %v1592_v21 = vld [vmem:[%s1681_s29 + $0x70] sm:$0xff]   ;;  %v1593_v23 = vld [vmem:[%s1681_s29 + $0x78] sm:$0xff]  }
  0x18   : > { %1491 = vmatpush3.bf16.msra.mxu0 %v1574_v5  ;;  %1542 = vmatpush3.bf16.msra.mxu1 %v1574_v5 }
  0x19   : > { %1492 = vmatprep.subr.bf16.mxu0 %v1575_v6  ;;  %1535 = vmatprep.subr.bf16.mxu1 %v1575_v6 }
  0x1c   : > { %1493 = vmatpush3.bf16.msra.mxu0 %v1575_v6  ;;  %1543 = vmatpush3.bf16.msra.mxu1 %v1575_v6 }
  0x1d   : > { %1494 = vmatprep.subr.bf16.mxu0 %v1576_v8  ;;  %1536 = vmatprep.subr.bf16.mxu1 %v1576_v8 }
  0x20   : > { %1495 = vmatpush3.bf16.msra.mxu0 %v1576_v8  ;;  %1544 = vmatpush3.bf16.msra.mxu1 %v1576_v8 }
  0x21   : > { %1496 = vmatprep.subr.bf16.mxu0 %v1577_v9  ;;  %1537 = vmatprep.subr.bf16.mxu1 %v1577_v9 }
  0x24   : > { %1497 = vmatpush3.bf16.msra.mxu0 %v1577_v9  ;;  %1545 = vmatpush3.bf16.msra.mxu1 %v1577_v9 }
  0x27   : > { %1499 = vmatmul.mubr.bf16.vlgmr.msra.gmra.mrb[0].mxu0 %v1579_v10  ;;  %1515 = vmatmul.mubr.bf16.vlgmr.msra.gmra.mrb[0].mxu1 %v1587_v11 }
  0x28   : > { %1502 = vmatprep.mubr.bf16.mxu0 %v1580_v12  ;;  %1518 = vmatprep.mubr.bf16.mxu1 %v1588_v13 }
  0x2f   : > { %1503 = vmatmul.mubr.bf16.gmra.mrb[4].mxu0 %v1581_v14  ;;  %1519 = vmatmul.mubr.bf16.gmra.mrb[4].mxu1 %v1589_v15 }
  0x30   : > { %1506 = vmatprep.mubr.bf16.mxu0 %v1582_v16  ;;  %1522 = vmatprep.mubr.bf16.mxu1 %v1590_v17 }
  0x37   : > { %1507 = vmatmul.mubr.bf16.gmra.mrb[8].mxu0 %v1583_v18  ;;  %1523 = vmatmul.mubr.bf16.gmra.mrb[8].mxu1 %v1591_v19 }
  0x38   : > { %1510 = vmatprep.mubr.bf16.mxu0 %v1584_v20  ;;  %1526 = vmatprep.mubr.bf16.mxu1 %v1592_v21 }
  0x3f   : > { %1511 = vmatmul.mubr.bf16.gmra.mrb[12].mxu0 %v1585_v22  ;;  %1527 = vmatmul.mubr.bf16.gmra.mrb[12].mxu1 %v1593_v23 }
  0xfa   : > { %v1500_v24 = vpop.f32.mrb[0].mxu0  ;;  %v1714_v25 = vpop.f32.mrb[0].mxu1 }
  0xfb   : > { %v600_v26 = vpop.f32.mrb[1].mxu0  ;;  %v1716_v27 = vpop.f32.mrb[1].mxu1  ;;  %v1026_v39 = vmul.f32 %v1500_v24, %v1500_v24 }
  0xfc   : > { %v1501_v28 = vpop.f32.mrb[2].mxu0  ;;  %v1725_v29 = vpop.f32.mrb[2].mxu1  ;;  %v1024_v30 = vmul.f32 %v600_v26, %v600_v26 }
  0xfd   : > { %v1371_v31 = vpack.c.bf16 %v1501_v28, %v1500_v24  ;;  %v603_v32 = vpop.f32.mrb[3].mxu0  ;;  %v1411_v33 = vpack.c.bf16 %v1725_v29, %v1714_v25  ;;  %v1729_v34 = vpop.f32.mrb[3].mxu1  ;;  %v1027_v42 = vmul.f32 %v1501_v28, %v1501_v28 }
  0xfe   : > { %v1366_v35 = vpack.c.bf16 %v603_v32, %v600_v26  ;;  %v986_v36 = vadd.f32 %v603_v32, %v600_v26  ;;  %v1025_v37 = vmul.f32 %v603_v32, %v603_v32  ;;  %v1406_v38 = vpack.c.bf16 %v1729_v34, %v1716_v27 }
  0xff   : > { %1443 = vst [vmem:[%s1723_s20 + $0x8] sm:$0xff] %v1371_v31   ;;  %1451 = vst [vmem:[%s1723_s20 + $0x48] sm:$0xff] %v1411_v33  }
 0x100   : > { %1367 = vst [vmem:[%s1723_s20] sm:$0xff] %v1366_v35   ;;  %v987_v40 = vadd.f32 %v1500_v24, %v986_v36  ;;  %v1056_v41 = vadd.f32 %v1025_v37, %v1024_v30  ;;  %1450 = vst [vmem:[%s1723_s20 + $0x40] sm:$0xff] %v1406_v38  }
 0x102   : > { %v1057_v43 = vadd.f32 %v1056_v41, %v1026_v39  ;;  %v1504_v44 = vpop.f32.mrb[4].mxu0  ;;  %v988_v45 = vadd.f32 %v1501_v28, %v987_v40  ;;  %v1737_v46 = vpop.f32.mrb[4].mxu1 }
 0x103   : > { %v616_v47 = vpop.f32.mrb[5].mxu0  ;;  %v1739_v48 = vpop.f32.mrb[5].mxu1  ;;  %v1030_v63 = vmul.f32 %v1504_v44, %v1504_v44 }
 0x104   : > { %v989_v49 = vadd.f32 %v988_v45, %v616_v47  ;;  %v1028_v50 = vmul.f32 %v616_v47, %v616_v47  ;;  %v1058_v51 = vadd.f32 %v1057_v43, %v1027_v42  ;;  %v1505_v52 = vpop.f32.mrb[6].mxu0  ;;  %v1741_v53 = vpop.f32.mrb[6].mxu1 }
 0x105   : > { %v1381_v54 = vpack.c.bf16 %v1505_v52, %v1504_v44  ;;  %v619_v55 = vpop.f32.mrb[7].mxu0  ;;  %v1421_v56 = vpack.c.bf16 %v1741_v53, %v1737_v46  ;;  %v1745_v57 = vpop.f32.mrb[7].mxu1  ;;  %v1031_v2 = vmul.f32 %v1505_v52, %v1505_v52 }
 0x106   : > { %v1059_v58 = vadd.f32 %v1058_v51, %v1028_v50  ;;  %v1376_v59 = vpack.c.bf16 %v619_v55, %v616_v47  ;;  %v990_v60 = vadd.f32 %v989_v49, %v619_v55  ;;  %v1029_v61 = vmul.f32 %v619_v55, %v619_v55 }
 0x107   : > { %1445 = vst [vmem:[%s1723_s20 + $0x18] sm:$0xff] %v1381_v54   ;;  %1453 = vst [vmem:[%s1723_s20 + $0x58] sm:$0xff] %v1421_v56   ;;  %v1416_v62 = vpack.c.bf16 %v1745_v57, %v1739_v48 }
 0x108   : > { %1444 = vst [vmem:[%s1723_s20 + $0x10] sm:$0xff] %v1376_v59   ;;  %v991_v0 = vadd.f32 %v1504_v44, %v990_v60  ;;  %v1060_v1 = vadd.f32 %v1059_v58, %v1029_v61  ;;  %v1040_v61 = vmul.f32 %v1716_v27, %v1716_v27 }
 0x109   : > { %1452 = vst [vmem:[%s1723_s20 + $0x50] sm:$0xff] %v1416_v62  }
 0x10a   : > { %v1061_v3 = vadd.f32 %v1060_v1, %v1030_v63  ;;  %v1508_v4 = vpop.f32.mrb[8].mxu0  ;;  %v992_v5 = vadd.f32 %v1505_v52, %v991_v0  ;;  %v1753_v6 = vpop.f32.mrb[8].mxu1 }
 0x10b   : > { %v632_v7 = vpop.f32.mrb[9].mxu0  ;;  %v1755_v8 = vpop.f32.mrb[9].mxu1  ;;  %v1034_v23 = vmul.f32 %v1508_v4, %v1508_v4 }
 0x10c   : > { %v993_v9 = vadd.f32 %v992_v5, %v632_v7  ;;  %v1032_v10 = vmul.f32 %v632_v7, %v632_v7  ;;  %v1062_v11 = vadd.f32 %v1061_v3, %v1031_v2  ;;  %v1509_v12 = vpop.f32.mrb[10].mxu0  ;;  %v1757_v13 = vpop.f32.mrb[10].mxu1  ;;  %v1041_v2 = vmul.f32 %v1729_v34, %v1729_v34 }
 0x10d   : > { %v1391_v14 = vpack.c.bf16 %v1509_v12, %v1508_v4  ;;  %v635_v15 = vpop.f32.mrb[11].mxu0  ;;  %v1431_v16 = vpack.c.bf16 %v1757_v13, %v1753_v6  ;;  %v1761_v17 = vpop.f32.mrb[11].mxu1  ;;  %v1035_v28 = vmul.f32 %v1509_v12, %v1509_v12  ;;  %v1042_v3 = vmul.f32 %v1714_v25, %v1714_v25 }
 0x10e   : > { %v1063_v18 = vadd.f32 %v1062_v11, %v1032_v10  ;;  %v1386_v19 = vpack.c.bf16 %v635_v15, %v632_v7  ;;  %v994_v20 = vadd.f32 %v993_v9, %v635_v15  ;;  %v1033_v21 = vmul.f32 %v635_v15, %v635_v15 }
 0x10f   : > { %1447 = vst [vmem:[%s1723_s20 + $0x28] sm:$0xff] %v1391_v14   ;;  %1455 = vst [vmem:[%s1723_s20 + $0x68] sm:$0xff] %v1431_v16   ;;  %v1426_v22 = vpack.c.bf16 %v1761_v17, %v1755_v8  ;;  %v1043_v7 = vmul.f32 %v1725_v29, %v1725_v29  ;;  %v1045_v15 = vmul.f32 %v1745_v57, %v1745_v57 }
 0x110   : > { %1446 = vst [vmem:[%s1723_s20 + $0x20] sm:$0xff] %v1386_v19   ;;  %v995_v24 = vadd.f32 %v1508_v4, %v994_v20  ;;  %v1064_v26 = vadd.f32 %v1063_v18, %v1033_v21 }
 0x111   : > { %1454 = vst [vmem:[%s1723_s20 + $0x60] sm:$0xff] %v1426_v22  }
 0x112   : > { %v1065_v30 = vadd.f32 %v1064_v26, %v1034_v23  ;;  %v1512_v31 = vpop.f32.mrb[12].mxu0  ;;  %v996_v32 = vadd.f32 %v1509_v12, %v995_v24  ;;  %v1769_v33 = vpop.f32.mrb[12].mxu1  ;;  %v1049_v24 = vmul.f32 %v1761_v17, %v1761_v17 }
 0x113   : > { %v648_v35 = vpop.f32.mrb[13].mxu0  ;;  %v712_v36 = vpop.f32.mrb[13].mxu1  ;;  %v1038_v54 = vmul.f32 %v1512_v31, %v1512_v31 }
 0x114   : > { %v997_v37 = vadd.f32 %v996_v32, %v648_v35  ;;  %v1036_v38 = vmul.f32 %v648_v35, %v648_v35  ;;  %v1066_v39 = vadd.f32 %v1065_v30, %v1035_v28  ;;  %v1513_v40 = vpop.f32.mrb[14].mxu0  ;;  %v1771_v41 = vpop.f32.mrb[14].mxu1 }
 0x115   : > { %v1401_v42 = vpack.c.bf16 %v1513_v40, %v1512_v31  ;;  %v651_v43 = vpop.f32.mrb[15].mxu0  ;;  %v1441_v44 = vpack.c.bf16 %v1771_v41, %v1769_v33  ;;  %v715_v45 = vpop.f32.mrb[15].mxu1  ;;  %v1039_v58 = vmul.f32 %v1513_v40, %v1513_v40 }
 0x116   : > { %v1067_v47 = vadd.f32 %v1066_v39, %v1036_v38  ;;  %v1396_v49 = vpack.c.bf16 %v651_v43, %v648_v35  ;;  %v998_v50 = vadd.f32 %v997_v37, %v651_v43  ;;  %v1037_v51 = vmul.f32 %v651_v43, %v651_v43 }
 0x117   : > { %1449 = vst [vmem:[%s1723_s20 + $0x38] sm:$0xff] %v1401_v42   ;;  %1457 = vst [vmem:[%s1723_s20 + $0x78] sm:$0xff] %v1441_v44   ;;  %v1436_v52 = vpack.c.bf16 %v715_v45, %v712_v36  ;;  %v1054_v39 = vmul.f32 %v1769_v33, %v1769_v33  ;;  %v1055_v42 = vmul.f32 %v1771_v41, %v1771_v41 }
 0x118   : > { %1448 = vst [vmem:[%s1723_s20 + $0x30] sm:$0xff] %v1396_v49   ;;  %v999_v55 = vadd.f32 %v1512_v31, %v998_v50  ;;  %v1068_v56 = vadd.f32 %v1067_v47, %v1037_v51  ;;  %v1052_v31 = vmul.f32 %v712_v36, %v712_v36 }
 0x119   : > { %1456 = vst [vmem:[%s1723_s20 + $0x70] sm:$0xff] %v1436_v52  }
 0x11a   : > { %v1069_v59 = vadd.f32 %v1068_v56, %v1038_v54  ;;  %v1000_v60 = vadd.f32 %v1513_v40, %v999_v55 }
 0x11c   : > { %v1001_v62 = vadd.f32 %v1000_v60, %v1716_v27  ;;  %v1070_v63 = vadd.f32 %v1069_v59, %v1039_v58  ;;  %v1044_v27 = vmul.f32 %v1739_v48, %v1739_v48 }
 0x11e   : > { %v1071_v0 = vadd.f32 %v1070_v63, %v1040_v61  ;;  %v1002_v1 = vadd.f32 %v1001_v62, %v1729_v34 }
 0x120   : > { %v1003_v4 = vadd.f32 %v1714_v25, %v1002_v1  ;;  %v1072_v5 = vadd.f32 %v1071_v0, %v1041_v2  ;;  %v1046_v25 = vmul.f32 %v1737_v46, %v1737_v46 }
 0x122   : > { %v1073_v9 = vadd.f32 %v1072_v5, %v1042_v3  ;;  %v1004_v10 = vadd.f32 %v1725_v29, %v1003_v4  ;;  %v1047_v29 = vmul.f32 %v1741_v53, %v1741_v53 }
 0x124   : > { %v1005_v11 = vadd.f32 %v1004_v10, %v1739_v48  ;;  %v1074_v12 = vadd.f32 %v1073_v9, %v1043_v7  ;;  %v1048_v48 = vmul.f32 %v1755_v8, %v1755_v8 }
 0x126   : > { %v1075_v14 = vadd.f32 %v1074_v12, %v1044_v27  ;;  %v1006_v34 = vadd.f32 %v1005_v11, %v1745_v57 }
 0x128   : > { %v1007_v16 = vadd.f32 %v1737_v46, %v1006_v34  ;;  %v1076_v18 = vadd.f32 %v1075_v14, %v1045_v15  ;;  %v1050_v46 = vmul.f32 %v1753_v6, %v1753_v6 }
 0x12a   : > { %v1077_v19 = vadd.f32 %v1076_v18, %v1046_v25  ;;  %v1008_v20 = vadd.f32 %v1741_v53, %v1007_v16  ;;  %v1051_v53 = vmul.f32 %v1757_v13, %v1757_v13 }
 0x12c   : > { %v1009_v21 = vadd.f32 %v1008_v20, %v1755_v8  ;;  %v1078_v22 = vadd.f32 %v1077_v19, %v1047_v29 }
 0x12e   : > { %v1079_v23 = vadd.f32 %v1078_v22, %v1048_v48  ;;  %v1010_v57 = vadd.f32 %v1009_v21, %v1761_v17  ;;  %v1053_v17 = vmul.f32 %v715_v45, %v715_v45 }
 0x130   : > { %v1011_v26 = vadd.f32 %v1753_v6, %v1010_v57  ;;  %v1080_v28 = vadd.f32 %v1079_v23, %v1049_v24 }
 0x132   : > { %v1081_v30 = vadd.f32 %v1080_v28, %v1050_v46  ;;  %v1012_v8 = vadd.f32 %v1757_v13, %v1011_v26 }
 0x134   : > { %v1013_v32 = vadd.f32 %v1012_v8, %v712_v36  ;;  %v1082_v35 = vadd.f32 %v1081_v30, %v1051_v53 }
 0x136   : > { %v1083_v37 = vadd.f32 %v1082_v35, %v1052_v31  ;;  %v1014_v38 = vadd.f32 %v1013_v32, %v715_v45 }
 0x138   : > { %v1015_v6 = vadd.f32 %v1769_v33, %v1014_v38  ;;  %v1084_v40 = vadd.f32 %v1083_v37, %v1053_v17 }
 0x13a   : > { %v1016_v43 = vadd.f32 %v1771_v41, %v1015_v6  ;;  %v1085_v44 = vadd.f32 %v1084_v40, %v1054_v39 }
 0x13c   : > { %v1017_v13 = vrot.slane %v1016_v43, 4  ;;  %v1086_v47 = vadd.f32 %v1085_v44, %v1055_v42 }
 0x13e   : > { %v1018_v36 = vadd.f32 %v1017_v13, %v1016_v43  ;;  %v1087_v49 = vrot.slane %v1086_v47, 4 }
 0x140   : > { %v1019_v50 = vrot.slane %v1018_v36, 2  ;;  %v1088_v51 = vadd.f32 %v1087_v49, %v1086_v47 }
 0x142   : > { %v1020_v45 = vadd.f32 %v1019_v50, %v1018_v36  ;;  %v1089_v52 = vrot.slane %v1088_v51, 2 }
 0x144   : > { %v1021_v54 = vrot.slane %v1020_v45, 1  ;;  %v1090_v55 = vadd.f32 %v1089_v52, %v1088_v51 }
 0x146   : > { %v1022_v33 = vadd.f32 %v1021_v54, %v1020_v45  ;;  %v1091_v56 = vrot.slane %v1090_v55, 1 }
 0x148   : > { %1023 = vst [vmem:[%s298_s23] sm:$0x1] %v1022_v33  ;;  %v1092_v41 = vadd.f32 %v1091_v56, %v1090_v55 }
 0x14a   : > { %1093 = vst [vmem:[%s304_s26] sm:$0x1] %v1092_v41 }
 0x14b PF: > { %s15_s17 = sadd.s32 1, %s1616_s17   ;;  %s1843_s15 = smov %s1612_s16 }
 0x14c   : > { %p12_p6 = scmp.ge.s32.totalorder %s15_s17, 34   ;;  %s1844_s16 = smov %s1846_s18 }
 0x14e   :  { %14 = sbr.rel (!%p12_p6) target bundleno = 2 (0x2), region = 93 }

// kernel: _conv_block_apply.3
= control target key start
LH: loop header
LB: loop body
LE: loop exit
PB: predicated region body
PF: predicated region fallthrough
CT: control target
= control target key end

     0   :  { %s1539_s12 = smov 0   ;;  %s1770_s0 = inlined_call_operand.vmem [shape: bf16[8192,128], index: 0, kind: input, shape index: {}]   ;;  %s1771_s1 = inlined_call_operand.vmem [shape: f32[1,128], index: 1, kind: input, shape index: {}]   ;;  %s1772_s2 = inlined_call_operand.vmem [shape: f32[1,128], index: 2, kind: input, shape index: {}]   ;;  %s1773_s3 = inlined_call_operand.vmem [shape: bf16[8192,128], index: 3, kind: output, shape index: {}]  }
   0x1 LB: > { %s1012_s13 = sadd.s32 4294967295, %s1517_s12   ;;  %p1016_p0 = scmp.ge.s32.totalorder %s1517_s12, 1  ;;  %s1517_s12 = sphi %s1539_s12, %s13_s12  }
   0x2   : > { %p138_p1 = scmp.lt.s32.totalorder %s1517_s12, 17 }
   0x4   : > { %p139_p2 = pnand %p1016_p0, %p138_p1 }
   0x5   : > { %s1017_s14 = sshll.u32 (!%p139_p2), %s1012_s13, 6  ;;  %v1560_v0 = vld [vmem:[%s1771_s1] ss:$0 sm:$0xff] (!%p139_p2) }
   0x6   : > { %142 = sbr.rel (%p139_p2) target bundleno = 129 (0x81), region = 32  ;;  %p163_p3 = scmp.lt.s32.totalorder (!%p139_p2), %s1017_s14, 1023  ;;  %v1569_v9 = vld [vmem:[%s1772_s2] ss:$0 sm:$0xff] (!%p139_p2) }
   0xd   : > { %s1775_s14 = smov (!%p163_p3, %s1017_s14), 1023 }
   0xe   : > { %s1018_s15 = sshll.u32 %s1775_s14, 2 }
   0xf   : > { %s1555_s18 = scalar_lea.vmem %s1770_s0, %s1018_s15  ;;  %s1592_s25 = scalar_lea.vmem %s1773_s3, %s1018_s15 }
  0x10   : > { %v1154_v1 = vld [vmem:[%s1555_s18] sm:$0xff]   ;;  %v1441_v2 = vld [vmem:[%s1555_s18 + $0x8] sm:$0xff]   ;;  %v1442_v3 = vld [vmem:[%s1555_s18 + $0x10] sm:$0xff]  }
  0x11   : > { %v1155_v4 = vunpack.c.l.bf16 %v1154_v1  ;;  %v1156_v5 = vunpack.c.h.bf16 %v1154_v1  ;;  %v1159_v6 = vunpack.c.l.bf16 %v1441_v2  ;;  %v1160_v7 = vunpack.c.h.bf16 %v1441_v2  ;;  %v1443_v8 = vld [vmem:[%s1555_s18 + $0x18] sm:$0xff]   ;;  %v1444_v36 = vld [vmem:[%s1555_s18 + $0x20] sm:$0xff]   ;;  %v1445_v41 = vld [vmem:[%s1555_s18 + $0x28] sm:$0xff]  }
  0x12   : > { %v1163_v10 = vunpack.c.l.bf16 %v1442_v3  ;;  %v1164_v11 = vunpack.c.h.bf16 %v1442_v3  ;;  %v1167_v12 = vunpack.c.l.bf16 %v1443_v8  ;;  %v1168_v13 = vunpack.c.h.bf16 %v1443_v8  ;;  %v1446_v52 = vld [vmem:[%s1555_s18 + $0x30] sm:$0xff]   ;;  %v1447_v53 = vld [vmem:[%s1555_s18 + $0x38] sm:$0xff]  }
  0x13   : > { %v309_v14 = vmul.f32 %v1155_v4, %v1560_v0  ;;  %v310_v15 = vmul.f32 %v1156_v5, %v1560_v0  ;;  %v311_v16 = vmul.f32 %v1159_v6, %v1560_v0  ;;  %v312_v17 = vmul.f32 %v1160_v7, %v1560_v0 }
  0x14   : > { %v313_v18 = vmul.f32 %v1163_v10, %v1560_v0  ;;  %v314_v19 = vmul.f32 %v1164_v11, %v1560_v0  ;;  %v315_v20 = vmul.f32 %v1167_v12, %v1560_v0  ;;  %v316_v21 = vmul.f32 %v1168_v13, %v1560_v0 }
  0x15   : > { %v380_v22 = vadd.f32 %v1569_v9, %v309_v14  ;;  %v381_v23 = vadd.f32 %v1569_v9, %v310_v15  ;;  %v382_v24 = vadd.f32 %v1569_v9, %v311_v16  ;;  %v383_v25 = vadd.f32 %v1569_v9, %v312_v17 }
  0x16   : > { %v384_v26 = vadd.f32 %v1569_v9, %v313_v18  ;;  %v385_v27 = vadd.f32 %v1569_v9, %v314_v19  ;;  %v386_v28 = vadd.f32 %v1569_v9, %v315_v20  ;;  %v387_v29 = vadd.f32 %v1569_v9, %v316_v21  ;;  %v1448_v20 = vld [vmem:[%s1555_s18 + $0x40] sm:$0xff]  }
  0x17   : > { %vm444_vm0 = vcmp.ge.f32.partialorder %v380_v22, 0.0  ;;  %vm445_vm1 = vcmp.ge.f32.partialorder %v381_v23, 0.0  ;;  %v508_v30 = vmul.f32 0.1, %v380_v22  ;;  %v509_v31 = vmul.f32 0.1, %v381_v23 }
  0x18   : > { %vm446_vm2 = vcmp.ge.f32.partialorder %v382_v24, 0.0  ;;  %vm447_vm3 = vcmp.ge.f32.partialorder %v383_v25, 0.0  ;;  %v510_v32 = vmul.f32 0.1, %v382_v24  ;;  %v511_v33 = vmul.f32 0.1, %v383_v25 }
  0x19   : > { %v572_v34 = vsel %vm444_vm0, %v380_v22, %v508_v30  ;;  %v573_v35 = vsel %vm445_vm1, %v381_v23, %v509_v31  ;;  %vm448_vm4 = vcmp.ge.f32.partialorder %v384_v26, 0.0  ;;  %vm449_vm5 = vcmp.ge.f32.partialorder %v385_v27, 0.0 }
  0x1a   : > { %v1284_v37 = vpack.c.bf16 %v573_v35, %v572_v34  ;;  %v574_v38 = vsel %vm446_vm2, %v382_v24, %v510_v32  ;;  %v575_v39 = vsel %vm447_vm3, %v383_v25, %v511_v33  ;;  %v512_v40 = vmul.f32 0.1, %v384_v26  ;;  %v1449_v24 = vld [vmem:[%s1555_s18 + $0x48] sm:$0xff]  }
  0x1b   : > { %v1289_v42 = vpack.c.bf16 %v575_v39, %v574_v38  ;;  %v513_v43 = vmul.f32 0.1, %v385_v27  ;;  %vm450_vm6 = vcmp.ge.f32.partialorder %v386_v28, 0.0  ;;  %vm451_vm7 = vcmp.ge.f32.partialorder %v387_v29, 0.0 }
  0x1c   : > { %1285 = vst [vmem:[%s1592_s25] sm:$0xff] %v1284_v37   ;;  %v576_v44 = vsel %vm448_vm4, %v384_v26, %v512_v40  ;;  %v514_v45 = vmul.f32 0.1, %v386_v28  ;;  %v515_v46 = vmul.f32 0.1, %v387_v29  ;;  %v1171_v47 = vunpack.c.l.bf16 %v1444_v36 }
  0x1d   : > { %1472 = vst [vmem:[%s1592_s25 + $0x8] sm:$0xff] %v1289_v42   ;;  %v577_v48 = vsel %vm449_vm5, %v385_v27, %v513_v43  ;;  %v1172_v49 = vunpack.c.h.bf16 %v1444_v36  ;;  %v1175_v50 = vunpack.c.l.bf16 %v1445_v41  ;;  %v1176_v51 = vunpack.c.h.bf16 %v1445_v41  ;;  %v1450_v36 = vld [vmem:[%s1555_s18 + $0x50] sm:$0xff]  }
  0x1e   : > { %v1294_v54 = vpack.c.bf16 %v577_v48, %v576_v44  ;;  %v578_v55 = vsel %vm450_vm6, %v386_v28, %v514_v45  ;;  %v579_v56 = vsel %vm451_vm7, %v387_v29, %v515_v46  ;;  %v317_v57 = vmul.f32 %v1171_v47, %v1560_v0 }
  0x1f   : > { %v1299_v58 = vpack.c.bf16 %v579_v56, %v578_v55  ;;  %v318_v59 = vmul.f32 %v1172_v49, %v1560_v0  ;;  %v319_v60 = vmul.f32 %v1175_v50, %v1560_v0  ;;  %v320_v61 = vmul.f32 %v1176_v51, %v1560_v0  ;;  %v1451_v55 = vld [vmem:[%s1555_s18 + $0x58] sm:$0xff]  }
  0x20   : > { %1473 = vst [vmem:[%s1592_s25 + $0x10] sm:$0xff] %v1294_v54   ;;  %v388_v62 = vadd.f32 %v1569_v9, %v317_v57  ;;  %v1179_v63 = vunpack.c.l.bf16 %v1446_v52  ;;  %v1180_v1 = vunpack.c.h.bf16 %v1446_v52  ;;  %v1183_v2 = vunpack.c.l.bf16 %v1447_v53 }
  0x21   : > { %1474 = vst [vmem:[%s1592_s25 + $0x18] sm:$0xff] %v1299_v58   ;;  %v389_v3 = vadd.f32 %v1569_v9, %v318_v59  ;;  %v390_v4 = vadd.f32 %v1569_v9, %v319_v60  ;;  %v391_v5 = vadd.f32 %v1569_v9, %v320_v61  ;;  %v1184_v6 = vunpack.c.h.bf16 %v1447_v53 }
  0x22   : > { %vm452_vm8 = vcmp.ge.f32.partialorder %v388_v62, 0.0  ;;  %v516_v7 = vmul.f32 0.1, %v388_v62  ;;  %v321_v8 = vmul.f32 %v1179_v63, %v1560_v0  ;;  %v322_v10 = vmul.f32 %v1180_v1, %v1560_v0  ;;  %v1452_v1 = vld [vmem:[%s1555_s18 + $0x60] sm:$0xff]  }
  0x23   : > { %vm453_vm9 = vcmp.ge.f32.partialorder %v389_v3, 0.0  ;;  %v517_v11 = vmul.f32 0.1, %v389_v3  ;;  %vm454_vm10 = vcmp.ge.f32.partialorder %v390_v4, 0.0  ;;  %vm455_vm11 = vcmp.ge.f32.partialorder %v391_v5, 0.0 }
  0x24   : > { %v580_v12 = vsel %vm452_vm8, %v388_v62, %v516_v7  ;;  %v518_v13 = vmul.f32 0.1, %v390_v4  ;;  %v519_v14 = vmul.f32 0.1, %v391_v5  ;;  %v392_v15 = vadd.f32 %v1569_v9, %v321_v8 }
  0x25   : > { %v581_v16 = vsel %vm453_vm9, %v389_v3, %v517_v11  ;;  %v393_v17 = vadd.f32 %v1569_v9, %v322_v10  ;;  %v323_v18 = vmul.f32 %v1183_v2, %v1560_v0  ;;  %v324_v19 = vmul.f32 %v1184_v6, %v1560_v0  ;;  %v1453_v6 = vld [vmem:[%s1555_s18 + $0x68] sm:$0xff]  }
  0x26   : > { %v1304_v21 = vpack.c.bf16 %v581_v16, %v580_v12  ;;  %v582_v22 = vsel %vm454_vm10, %v390_v4, %v518_v13  ;;  %v583_v23 = vsel %vm455_vm11, %v391_v5, %v519_v14  ;;  %vm456_vm12 = vcmp.ge.f32.partialorder %v392_v15, 0.0 }
  0x27   : > { %v1309_v25 = vpack.c.bf16 %v583_v23, %v582_v22  ;;  %vm457_vm13 = vcmp.ge.f32.partialorder %v393_v17, 0.0  ;;  %v520_v26 = vmul.f32 0.1, %v392_v15  ;;  %v521_v27 = vmul.f32 0.1, %v393_v17  ;;  %v1454_v22 = vld [vmem:[%s1555_s18 + $0x70] sm:$0xff]  }
  0x28   : > { %1475 = vst [vmem:[%s1592_s25 + $0x20] sm:$0xff] %v1304_v21   ;;  %v394_v28 = vadd.f32 %v1569_v9, %v323_v18  ;;  %v395_v29 = vadd.f32 %v1569_v9, %v324_v19  ;;  %v1187_v30 = vunpack.c.l.bf16 %v1448_v20  ;;  %v1188_v31 = vunpack.c.h.bf16 %v1448_v20 }
  0x29   : > { %1476 = vst [vmem:[%s1592_s25 + $0x28] sm:$0xff] %v1309_v25   ;;  %v584_v32 = vsel %vm456_vm12, %v392_v15, %v520_v26  ;;  %v585_v33 = vsel %vm457_vm13, %v393_v17, %v521_v27  ;;  %v1191_v34 = vunpack.c.l.bf16 %v1449_v24  ;;  %v1192_v35 = vunpack.c.h.bf16 %v1449_v24 }
  0x2a   : > { %v1314_v37 = vpack.c.bf16 %v585_v33, %v584_v32  ;;  %vm458_vm14 = vcmp.ge.f32.partialorder %v394_v28, 0.0  ;;  %vm459_vm15 = vcmp.ge.f32.partialorder %v395_v29, 0.0  ;;  %v522_v38 = vmul.f32 0.1, %v394_v28 }
  0x2b   : > { %v523_v39 = vmul.f32 0.1, %v395_v29  ;;  %v325_v40 = vmul.f32 %v1187_v30, %v1560_v0  ;;  %v326_v41 = vmul.f32 %v1188_v31, %v1560_v0  ;;  %v327_v42 = vmul.f32 %v1191_v34, %v1560_v0 }
  0x2c   : > { %1477 = vst [vmem:[%s1592_s25 + $0x30] sm:$0xff] %v1314_v37   ;;  %v586_v43 = vsel %vm458_vm14, %v394_v28, %v522_v38  ;;  %v328_v44 = vmul.f32 %v1192_v35, %v1560_v0  ;;  %v1195_v45 = vunpack.c.l.bf16 %v1450_v36  ;;  %v1196_v46 = vunpack.c.h.bf16 %v1450_v36 }
  0x2d   : > { %v587_v47 = vsel %vm459_vm15, %v395_v29, %v523_v39  ;;  %v396_v48 = vadd.f32 %v1569_v9, %v325_v40  ;;  %v397_v49 = vadd.f32 %v1569_v9, %v326_v41  ;;  %v398_v50 = vadd.f32 %v1569_v9, %v327_v42  ;;  %v1455_v41 = vld [vmem:[%s1555_s18 + $0x78] sm:$0xff]  }
  0x2e   : > { %v1319_v51 = vpack.c.bf16 %v587_v47, %v586_v43  ;;  %v399_v52 = vadd.f32 %v1569_v9, %v328_v44  ;;  %v329_v53 = vmul.f32 %v1195_v45, %v1560_v0  ;;  %v330_v54 = vmul.f32 %v1196_v46, %v1560_v0  ;;  %v1456_v46 = vld [vmem:[%s1555_s18 + $0x80] sm:$0xff]   ;;  %v1457_v47 = vld [vmem:[%s1555_s18 + $0x88] sm:$0xff]  }
  0x2f   : > { %vm460_vm0 = vcmp.ge.f32.partialorder %v396_v48, 0.0  ;;  %vm461_vm1 = vcmp.ge.f32.partialorder %v397_v49, 0.0  ;;  %v524_v56 = vmul.f32 0.1, %v396_v48  ;;  %v525_v57 = vmul.f32 0.1, %v397_v49 }
  0x30   : > { %1478 = vst [vmem:[%s1592_s25 + $0x38] sm:$0xff] %v1319_v51   ;;  %vm462_vm2 = vcmp.ge.f32.partialorder %v398_v50, 0.0  ;;  %vm463_vm3 = vcmp.ge.f32.partialorder %v399_v52, 0.0  ;;  %v526_v58 = vmul.f32 0.1, %v398_v50  ;;  %v400_v62 = vadd.f32 %v1569_v9, %v329_v53 }
  0x31   : > { %v527_v59 = vmul.f32 0.1, %v399_v52  ;;  %v588_v60 = vsel %vm460_vm0, %v396_v48, %v524_v56  ;;  %v589_v61 = vsel %vm461_vm1, %v397_v49, %v525_v57  ;;  %v401_v63 = vadd.f32 %v1569_v9, %v330_v54 }
  0x32   : > { %v1324_v2 = vpack.c.bf16 %v589_v61, %v588_v60  ;;  %v590_v3 = vsel %vm462_vm2, %v398_v50, %v526_v58  ;;  %v1199_v5 = vunpack.c.l.bf16 %v1451_v55  ;;  %vm464_vm4 = vcmp.ge.f32.partialorder %v400_v62, 0.0 }
  0x33   : > { %v591_v4 = vsel %vm463_vm3, %v399_v52, %v527_v59  ;;  %vm465_vm5 = vcmp.ge.f32.partialorder %v401_v63, 0.0  ;;  %v528_v8 = vmul.f32 0.1, %v400_v62  ;;  %v529_v10 = vmul.f32 0.1, %v401_v63 }
  0x34   : > { %v1329_v7 = vpack.c.bf16 %v591_v4, %v590_v3  ;;  %1479 = vst [vmem:[%s1592_s25 + $0x40] sm:$0xff] %v1324_v2   ;;  %v1200_v11 = vunpack.c.h.bf16 %v1451_v55  ;;  %v331_v12 = vmul.f32 %v1199_v5, %v1560_v0  ;;  %v1203_v13 = vunpack.c.l.bf16 %v1452_v1 }
  0x35   : > { %v592_v14 = vsel %vm464_vm4, %v400_v62, %v528_v8  ;;  %v1204_v15 = vunpack.c.h.bf16 %v1452_v1  ;;  %v1207_v16 = vunpack.c.l.bf16 %v1453_v6  ;;  %v1208_v17 = vunpack.c.h.bf16 %v1453_v6 }
  0x36   : > { %1480 = vst [vmem:[%s1592_s25 + $0x48] sm:$0xff] %v1329_v7   ;;  %v593_v18 = vsel %vm465_vm5, %v401_v63, %v529_v10  ;;  %v332_v19 = vmul.f32 %v1200_v11, %v1560_v0  ;;  %v402_v20 = vadd.f32 %v1569_v9, %v331_v12  ;;  %v333_v21 = vmul.f32 %v1203_v13, %v1560_v0 }
  0x37   : > { %v1334_v23 = vpack.c.bf16 %v593_v18, %v592_v14  ;;  %v334_v24 = vmul.f32 %v1204_v15, %v1560_v0  ;;  %v335_v25 = vmul.f32 %v1207_v16, %v1560_v0  ;;  %v336_v26 = vmul.f32 %v1208_v17, %v1560_v0  ;;  %v1458_v14 = vld [vmem:[%s1555_s18 + $0x90] sm:$0xff]  }
  0x38   : > { %v403_v27 = vadd.f32 %v1569_v9, %v332_v19  ;;  %vm466_vm6 = vcmp.ge.f32.partialorder %v402_v20, 0.0  ;;  %v530_v28 = vmul.f32 0.1, %v402_v20  ;;  %v404_v29 = vadd.f32 %v1569_v9, %v333_v21 }
  0x39   : > { %1481 = vst [vmem:[%s1592_s25 + $0x50] sm:$0xff] %v1334_v23   ;;  %v405_v30 = vadd.f32 %v1569_v9, %v334_v24  ;;  %v406_v31 = vadd.f32 %v1569_v9, %v335_v25  ;;  %v407_v32 = vadd.f32 %v1569_v9, %v336_v26  ;;  %v1211_v33 = vunpack.c.l.bf16 %v1454_v22  ;;  %v1459_v25 = vld [vmem:[%s1555_s18 + $0x98] sm:$0xff]  }
  0x3a   : > { %vm467_vm7 = vcmp.ge.f32.partialorder %v403_v27, 0.0  ;;  %v531_v34 = vmul.f32 0.1, %v403_v27  ;;  %v594_v35 = vsel %vm466_vm6, %v402_v20, %v530_v28  ;;  %vm468_vm8 = vcmp.ge.f32.partialorder %v404_v29, 0.0 }
  0x3b   : > { %vm469_vm9 = vcmp.ge.f32.partialorder %v405_v30, 0.0  ;;  %v532_v36 = vmul.f32 0.1, %v404_v29  ;;  %v533_v37 = vmul.f32 0.1, %v405_v30  ;;  %vm470_vm10 = vcmp.ge.f32.partialorder %v406_v31, 0.0 }
  0x3c   : > { %v595_v38 = vsel %vm467_vm7, %v403_v27, %v531_v34  ;;  %vm471_vm11 = vcmp.ge.f32.partialorder %v407_v32, 0.0  ;;  %v534_v39 = vmul.f32 0.1, %v406_v31  ;;  %v535_v40 = vmul.f32 0.1, %v407_v32 }
  0x3d   : > { %v1339_v42 = vpack.c.bf16 %v595_v38, %v594_v35  ;;  %v596_v43 = vsel %vm468_vm8, %v404_v29, %v532_v36  ;;  %v597_v44 = vsel %vm469_vm9, %v405_v30, %v533_v37  ;;  %v1212_v45 = vunpack.c.h.bf16 %v1454_v22  ;;  %v1460_v30 = vld [vmem:[%s1555_s18 + $0xa0] sm:$0xff]  }
  0x3e   : > { %v1344_v48 = vpack.c.bf16 %v597_v44, %v596_v43  ;;  %v598_v49 = vsel %vm470_vm10, %v406_v31, %v534_v39  ;;  %v599_v50 = vsel %vm471_vm11, %v407_v32, %v535_v40  ;;  %v337_v51 = vmul.f32 %v1211_v33, %v1560_v0 }
  0x3f   : > { %1482 = vst [vmem:[%s1592_s25 + $0x58] sm:$0xff] %v1339_v42   ;;  %v1349_v52 = vpack.c.bf16 %v599_v50, %v598_v49  ;;  %v338_v53 = vmul.f32 %v1212_v45, %v1560_v0  ;;  %v1215_v54 = vunpack.c.l.bf16 %v1455_v41  ;;  %v1216_v55 = vunpack.c.h.bf16 %v1455_v41  ;;  %v1461_v45 = vld [vmem:[%s1555_s18 + $0xa8] sm:$0xff]  }
  0x40   : > { %1483 = vst [vmem:[%s1592_s25 + $0x60] sm:$0xff] %v1344_v48   ;;  %v408_v56 = vadd.f32 %v1569_v9, %v337_v51  ;;  %v1219_v57 = vunpack.c.l.bf16 %v1456_v46  ;;  %v1220_v58 = vunpack.c.h.bf16 %v1456_v46  ;;  %v1223_v59 = vunpack.c.l.bf16 %v1457_v47 }
  0x41   : > { %1484 = vst [vmem:[%s1592_s25 + $0x68] sm:$0xff] %v1349_v52   ;;  %v409_v60 = vadd.f32 %v1569_v9, %v338_v53  ;;  %v339_v61 = vmul.f32 %v1215_v54, %v1560_v0  ;;  %v340_v62 = vmul.f32 %v1216_v55, %v1560_v0  ;;  %v1224_v63 = vunpack.c.h.bf16 %v1457_v47 }
  0x42   : > { %vm472_vm12 = vcmp.ge.f32.partialorder %v408_v56, 0.0  ;;  %v536_v1 = vmul.f32 0.1, %v408_v56  ;;  %v341_v2 = vmul.f32 %v1219_v57, %v1560_v0  ;;  %v342_v3 = vmul.f32 %v1220_v58, %v1560_v0 }
  0x43   : > { %vm473_vm13 = vcmp.ge.f32.partialorder %v409_v60, 0.0  ;;  %v537_v4 = vmul.f32 0.1, %v409_v60  ;;  %v410_v5 = vadd.f32 %v1569_v9, %v339_v61  ;;  %v411_v6 = vadd.f32 %v1569_v9, %v340_v62  ;;  %v1462_v62 = vld [vmem:[%s1555_s18 + $0xb0] sm:$0xff]  }
  0x44   : > { %v600_v7 = vsel %vm472_vm12, %v408_v56, %v536_v1  ;;  %v412_v8 = vadd.f32 %v1569_v9, %v341_v2  ;;  %v413_v10 = vadd.f32 %v1569_v9, %v342_v3  ;;  %v343_v11 = vmul.f32 %v1223_v59, %v1560_v0  ;;  %v1463_v3 = vld [vmem:[%s1555_s18 + $0xb8] sm:$0xff]  }
  0x45   : > { %v601_v12 = vsel %vm473_vm13, %v409_v60, %v537_v4  ;;  %vm474_vm14 = vcmp.ge.f32.partialorder %v410_v5, 0.0  ;;  %vm475_vm15 = vcmp.ge.f32.partialorder %v411_v6, 0.0  ;;  %v538_v13 = vmul.f32 0.1, %v410_v5 }
  0x46   : > { %v1354_v15 = vpack.c.bf16 %v601_v12, %v600_v7  ;;  %v539_v16 = vmul.f32 0.1, %v411_v6  ;;  %vm476_vm0 = vcmp.ge.f32.partialorder %v412_v8, 0.0  ;;  %vm477_vm1 = vcmp.ge.f32.partialorder %v413_v10, 0.0 }
  0x47   : > { %v602_v17 = vsel %vm474_vm14, %v410_v5, %v538_v13  ;;  %v540_v18 = vmul.f32 0.1, %v412_v8  ;;  %v541_v19 = vmul.f32 0.1, %v413_v10  ;;  %v344_v20 = vmul.f32 %v1224_v63, %v1560_v0 }
  0x48   : > { %1485 = vst [vmem:[%s1592_s25 + $0x70] sm:$0xff] %v1354_v15   ;;  %v603_v21 = vsel %vm475_vm15, %v411_v6, %v539_v16  ;;  %v414_v22 = vadd.f32 %v1569_v9, %v343_v11  ;;  %v1227_v23 = vunpack.c.l.bf16 %v1458_v14  ;;  %v1228_v24 = vunpack.c.h.bf16 %v1458_v14 }
  0x49   : > { %v1359_v26 = vpack.c.bf16 %v603_v21, %v602_v17  ;;  %v604_v27 = vsel %vm476_vm0, %v412_v8, %v540_v18  ;;  %v605_v28 = vsel %vm477_vm1, %v413_v10, %v541_v19  ;;  %v415_v29 = vadd.f32 %v1569_v9, %v344_v20  ;;  %v1464_v20 = vld [vmem:[%s1555_s18 + $0xc0] sm:$0xff]  }
  0x4a   : > { %v1364_v31 = vpack.c.bf16 %v605_v28, %v604_v27  ;;  %vm478_vm2 = vcmp.ge.f32.partialorder %v414_v22, 0.0  ;;  %v542_v32 = vmul.f32 0.1, %v414_v22  ;;  %v345_v33 = vmul.f32 %v1227_v23, %v1560_v0 }
  0x4b   : > { %1486 = vst [vmem:[%s1592_s25 + $0x78] sm:$0xff] %v1359_v26   ;;  %vm479_vm3 = vcmp.ge.f32.partialorder %v415_v29, 0.0  ;;  %v543_v34 = vmul.f32 0.1, %v415_v29  ;;  %v346_v35 = vmul.f32 %v1228_v24, %v1560_v0  ;;  %v1231_v36 = vunpack.c.l.bf16 %v1459_v25 }
  0x4c   : > { %1487 = vst [vmem:[%s1592_s25 + $0x80] sm:$0xff] %v1364_v31   ;;  %v606_v37 = vsel %vm478_vm2, %v414_v22, %v542_v32  ;;  %v416_v38 = vadd.f32 %v1569_v9, %v345_v33  ;;  %v1232_v39 = vunpack.c.h.bf16 %v1459_v25  ;;  %v1235_v40 = vunpack.c.l.bf16 %v1460_v30 }
  0x4d   : > { %v607_v41 = vsel %vm479_vm3, %v415_v29, %v543_v34  ;;  %v417_v42 = vadd.f32 %v1569_v9, %v346_v35  ;;  %v347_v43 = vmul.f32 %v1231_v36, %v1560_v0  ;;  %v1236_v44 = vunpack.c.h.bf16 %v1460_v30  ;;  %v1465_v34 = vld [vmem:[%s1555_s18 + $0xc8] sm:$0xff]  }
  0x4e   : > { %v1369_v46 = vpack.c.bf16 %v607_v41, %v606_v37  ;;  %vm480_vm4 = vcmp.ge.f32.partialorder %v416_v38, 0.0  ;;  %v544_v47 = vmul.f32 0.1, %v416_v38  ;;  %v348_v48 = vmul.f32 %v1232_v39, %v1560_v0 }
  0x4f   : > { %vm481_vm5 = vcmp.ge.f32.partialorder %v417_v42, 0.0  ;;  %v545_v49 = vmul.f32 0.1, %v417_v42  ;;  %v418_v50 = vadd.f32 %v1569_v9, %v347_v43  ;;  %v349_v51 = vmul.f32 %v1235_v40, %v1560_v0 }
  0x50   : > { %1488 = vst [vmem:[%s1592_s25 + $0x88] sm:$0xff] %v1369_v46   ;;  %v608_v52 = vsel %vm480_vm4, %v416_v38, %v544_v47  ;;  %v419_v53 = vadd.f32 %v1569_v9, %v348_v48  ;;  %v350_v54 = vmul.f32 %v1236_v44, %v1560_v0  ;;  %v1239_v55 = vunpack.c.l.bf16 %v1461_v45  ;;  %v1466_v44 = vld [vmem:[%s1555_s18 + $0xd0] sm:$0xff]  }
  0x51   : > { %v609_v56 = vsel %vm481_vm5, %v417_v42, %v545_v49  ;;  %vm482_vm6 = vcmp.ge.f32.partialorder %v418_v50, 0.0  ;;  %v546_v57 = vmul.f32 0.1, %v418_v50  ;;  %v420_v58 = vadd.f32 %v1569_v9, %v349_v51 }
  0x52   : > { %v1374_v59 = vpack.c.bf16 %v609_v56, %v608_v52  ;;  %vm483_vm7 = vcmp.ge.f32.partialorder %v419_v53, 0.0  ;;  %v547_v60 = vmul.f32 0.1, %v419_v53  ;;  %v421_v61 = vadd.f32 %v1569_v9, %v350_v54 }
  0x53   : > { %v610_v63 = vsel %vm482_vm6, %v418_v50, %v546_v57  ;;  %vm484_vm8 = vcmp.ge.f32.partialorder %v420_v58, 0.0  ;;  %v548_v1 = vmul.f32 0.1, %v420_v58  ;;  %v1240_v2 = vunpack.c.h.bf16 %v1461_v45  ;;  %v1467_v45 = vld [vmem:[%s1555_s18 + $0xd8] sm:$0xff]  }
  0x54   : > { %1489 = vst [vmem:[%s1592_s25 + $0x90] sm:$0xff] %v1374_v59   ;;  %v611_v4 = vsel %vm483_vm7, %v419_v53, %v547_v60  ;;  %vm485_vm9 = vcmp.ge.f32.partialorder %v421_v61, 0.0  ;;  %v549_v5 = vmul.f32 0.1, %v421_v61  ;;  %v351_v6 = vmul.f32 %v1239_v55, %v1560_v0 }
  0x55   : > { %v1379_v7 = vpack.c.bf16 %v611_v4, %v610_v63  ;;  %v612_v8 = vsel %vm484_vm8, %v420_v58, %v548_v1  ;;  %v352_v10 = vmul.f32 %v1240_v2, %v1560_v0  ;;  %v1243_v11 = vunpack.c.l.bf16 %v1462_v62 }
  0x56   : > { %v613_v12 = vsel %vm485_vm9, %v421_v61, %v549_v5  ;;  %v422_v13 = vadd.f32 %v1569_v9, %v351_v6  ;;  %v1244_v14 = vunpack.c.h.bf16 %v1462_v62  ;;  %v1247_v15 = vunpack.c.l.bf16 %v1463_v3 }
  0x57   : > { %1490 = vst [vmem:[%s1592_s25 + $0x98] sm:$0xff] %v1379_v7   ;;  %v1384_v16 = vpack.c.bf16 %v613_v12, %v612_v8  ;;  %v423_v17 = vadd.f32 %v1569_v9, %v352_v10  ;;  %v353_v18 = vmul.f32 %v1243_v11, %v1560_v0  ;;  %v1248_v19 = vunpack.c.h.bf16 %v1463_v3  ;;  %v1468_v12 = vld [vmem:[%s1555_s18 + $0xe0] sm:$0xff]  }
  0x58   : > { %vm486_vm10 = vcmp.ge.f32.partialorder %v422_v13, 0.0  ;;  %v550_v21 = vmul.f32 0.1, %v422_v13  ;;  %v354_v22 = vmul.f32 %v1244_v14, %v1560_v0  ;;  %v355_v23 = vmul.f32 %v1247_v15, %v1560_v0 }
  0x59   : > { %1491 = vst [vmem:[%s1592_s25 + $0xa0] sm:$0xff] %v1384_v16   ;;  %vm487_vm11 = vcmp.ge.f32.partialorder %v423_v17, 0.0  ;;  %v551_v24 = vmul.f32 0.1, %v423_v17  ;;  %v424_v25 = vadd.f32 %v1569_v9, %v353_v18  ;;  %v356_v26 = vmul.f32 %v1248_v19, %v1560_v0  ;;  %v1469_v16 = vld [vmem:[%s1555_s18 + $0xe8] sm:$0xff]  }
  0x5a   : > { %v614_v27 = vsel %vm486_vm10, %v422_v13, %v550_v21  ;;  %v425_v28 = vadd.f32 %v1569_v9, %v354_v22  ;;  %v426_v29 = vadd.f32 %v1569_v9, %v355_v23  ;;  %v1251_v30 = vunpack.c.l.bf16 %v1464_v20 }
  0x5b   : > { %v615_v31 = vsel %vm487_vm11, %v423_v17, %v551_v24  ;;  %vm488_vm12 = vcmp.ge.f32.partialorder %v424_v25, 0.0  ;;  %v552_v32 = vmul.f32 0.1, %v424_v25  ;;  %v427_v33 = vadd.f32 %v1569_v9, %v356_v26 }
  0x5c   : > { %v1389_v35 = vpack.c.bf16 %v615_v31, %v614_v27  ;;  %vm489_vm13 = vcmp.ge.f32.partialorder %v425_v28, 0.0  ;;  %v553_v36 = vmul.f32 0.1, %v425_v28  ;;  %vm490_vm14 = vcmp.ge.f32.partialorder %v426_v29, 0.0 }
  0x5d   : > { %v616_v37 = vsel %vm488_vm12, %v424_v25, %v552_v32  ;;  %vm491_vm15 = vcmp.ge.f32.partialorder %v427_v33, 0.0  ;;  %v554_v38 = vmul.f32 0.1, %v426_v29  ;;  %v555_v39 = vmul.f32 0.1, %v427_v33 }
  0x5e   : > { %1492 = vst [vmem:[%s1592_s25 + $0xa8] sm:$0xff] %v1389_v35   ;;  %v617_v40 = vsel %vm489_vm13, %v425_v28, %v553_v36  ;;  %v1252_v41 = vunpack.c.h.bf16 %v1464_v20  ;;  %v357_v42 = vmul.f32 %v1251_v30, %v1560_v0  ;;  %v1255_v43 = vunpack.c.l.bf16 %v1465_v34  ;;  %v1470_v28 = vld [vmem:[%s1555_s18 + $0xf0] sm:$0xff]  }
  0x5f   : > { %v1394_v46 = vpack.c.bf16 %v617_v40, %v616_v37  ;;  %v618_v47 = vsel %vm490_vm14, %v426_v29, %v554_v38  ;;  %v619_v48 = vsel %vm491_vm15, %v427_v33, %v555_v39  ;;  %v1256_v49 = vunpack.c.h.bf16 %v1465_v34 }
  0x60   : > { %v1399_v50 = vpack.c.bf16 %v619_v48, %v618_v47  ;;  %v358_v51 = vmul.f32 %v1252_v41, %v1560_v0  ;;  %v428_v52 = vadd.f32 %v1569_v9, %v357_v42  ;;  %v359_v53 = vmul.f32 %v1255_v43, %v1560_v0  ;;  %v1471_v47 = vld [vmem:[%s1555_s18 + $0xf8] sm:$0xff]  }
  0x61   : > { %1493 = vst [vmem:[%s1592_s25 + $0xb0] sm:$0xff] %v1394_v46   ;;  %v360_v54 = vmul.f32 %v1256_v49, %v1560_v0  ;;  %v1259_v55 = vunpack.c.l.bf16 %v1466_v44  ;;  %v1260_v56 = vunpack.c.h.bf16 %v1466_v44  ;;  %v1263_v57 = vunpack.c.l.bf16 %v1467_v45 }
  0x62   : > { %1494 = vst [vmem:[%s1592_s25 + $0xb8] sm:$0xff] %v1399_v50   ;;  %v429_v58 = vadd.f32 %v1569_v9, %v358_v51  ;;  %vm492_vm0 = vcmp.ge.f32.partialorder %v428_v52, 0.0  ;;  %v556_v59 = vmul.f32 0.1, %v428_v52  ;;  %v430_v60 = vadd.f32 %v1569_v9, %v359_v53 }
  0x63   : > { %v431_v61 = vadd.f32 %v1569_v9, %v360_v54  ;;  %v361_v62 = vmul.f32 %v1259_v55, %v1560_v0  ;;  %v362_v63 = vmul.f32 %v1260_v56, %v1560_v0  ;;  %v1264_v1 = vunpack.c.h.bf16 %v1467_v45 }
  0x64   : > { %vm493_vm1 = vcmp.ge.f32.partialorder %v429_v58, 0.0  ;;  %v557_v2 = vmul.f32 0.1, %v429_v58  ;;  %v620_v3 = vsel %vm492_vm0, %v428_v52, %v556_v59  ;;  %vm494_vm2 = vcmp.ge.f32.partialorder %v430_v60, 0.0 }
  0x65   : > { %vm495_vm3 = vcmp.ge.f32.partialorder %v431_v61, 0.0  ;;  %v558_v4 = vmul.f32 0.1, %v430_v60  ;;  %v559_v5 = vmul.f32 0.1, %v431_v61  ;;  %v432_v6 = vadd.f32 %v1569_v9, %v361_v62 }
  0x66   : > { %v621_v7 = vsel %vm493_vm1, %v429_v58, %v557_v2  ;;  %v433_v8 = vadd.f32 %v1569_v9, %v362_v63  ;;  %v363_v10 = vmul.f32 %v1263_v57, %v1560_v0  ;;  %v364_v11 = vmul.f32 %v1264_v1, %v1560_v0 }
  0x67   : > { %v1404_v13 = vpack.c.bf16 %v621_v7, %v620_v3  ;;  %v622_v14 = vsel %vm494_vm2, %v430_v60, %v558_v4  ;;  %v623_v15 = vsel %vm495_vm3, %v431_v61, %v559_v5  ;;  %vm496_vm4 = vcmp.ge.f32.partialorder %v432_v6, 0.0 }
  0x68   : > { %v1409_v17 = vpack.c.bf16 %v623_v15, %v622_v14  ;;  %vm497_vm5 = vcmp.ge.f32.partialorder %v433_v8, 0.0  ;;  %v560_v18 = vmul.f32 0.1, %v432_v6  ;;  %v561_v19 = vmul.f32 0.1, %v433_v8 }
  0x69   : > { %1495 = vst [vmem:[%s1592_s25 + $0xc0] sm:$0xff] %v1404_v13   ;;  %v434_v20 = vadd.f32 %v1569_v9, %v363_v10  ;;  %v435_v21 = vadd.f32 %v1569_v9, %v364_v11  ;;  %v1267_v22 = vunpack.c.l.bf16 %v1468_v12  ;;  %v1268_v23 = vunpack.c.h.bf16 %v1468_v12 }
  0x6a   : > { %1496 = vst [vmem:[%s1592_s25 + $0xc8] sm:$0xff] %v1409_v17   ;;  %v624_v24 = vsel %vm496_vm4, %v432_v6, %v560_v18  ;;  %v625_v25 = vsel %vm497_vm5, %v433_v8, %v561_v19  ;;  %v1271_v26 = vunpack.c.l.bf16 %v1469_v16  ;;  %v1272_v27 = vunpack.c.h.bf16 %v1469_v16 }
  0x6b   : > { %v1414_v29 = vpack.c.bf16 %v625_v25, %v624_v24  ;;  %vm498_vm6 = vcmp.ge.f32.partialorder %v434_v20, 0.0  ;;  %vm499_vm7 = vcmp.ge.f32.partialorder %v435_v21, 0.0  ;;  %v562_v30 = vmul.f32 0.1, %v434_v20 }
  0x6c   : > { %v563_v31 = vmul.f32 0.1, %v435_v21  ;;  %v365_v32 = vmul.f32 %v1267_v22, %v1560_v0  ;;  %v366_v33 = vmul.f32 %v1268_v23, %v1560_v0  ;;  %v367_v34 = vmul.f32 %v1271_v26, %v1560_v0 }
  0x6d   : > { %1497 = vst [vmem:[%s1592_s25 + $0xd0] sm:$0xff] %v1414_v29   ;;  %v626_v35 = vsel %vm498_vm6, %v434_v20, %v562_v30  ;;  %v368_v36 = vmul.f32 %v1272_v27, %v1560_v0  ;;  %v1275_v37 = vunpack.c.l.bf16 %v1470_v28  ;;  %v1276_v38 = vunpack.c.h.bf16 %v1470_v28 }
  0x6e   : > { %v627_v39 = vsel %vm499_vm7, %v435_v21, %v563_v31  ;;  %v436_v40 = vadd.f32 %v1569_v9, %v365_v32  ;;  %v437_v41 = vadd.f32 %v1569_v9, %v366_v33  ;;  %v438_v42 = vadd.f32 %v1569_v9, %v367_v34 }
  0x6f   : > { %v1419_v43 = vpack.c.bf16 %v627_v39, %v626_v35  ;;  %v439_v44 = vadd.f32 %v1569_v9, %v368_v36  ;;  %v369_v45 = vmul.f32 %v1275_v37, %v1560_v0  ;;  %v370_v46 = vmul.f32 %v1276_v38, %v1560_v0 }
  0x70   : > { %vm500_vm8 = vcmp.ge.f32.partialorder %v436_v40, 0.0  ;;  %vm501_vm9 = vcmp.ge.f32.partialorder %v437_v41, 0.0  ;;  %v564_v48 = vmul.f32 0.1, %v436_v40  ;;  %v565_v49 = vmul.f32 0.1, %v437_v41 }
  0x71   : > { %1498 = vst [vmem:[%s1592_s25 + $0xd8] sm:$0xff] %v1419_v43   ;;  %vm502_vm10 = vcmp.ge.f32.partialorder %v438_v42, 0.0  ;;  %vm503_vm11 = vcmp.ge.f32.partialorder %v439_v44, 0.0  ;;  %v566_v50 = vmul.f32 0.1, %v438_v42  ;;  %v440_v54 = vadd.f32 %v1569_v9, %v369_v45 }
  0x72   : > { %v567_v51 = vmul.f32 0.1, %v439_v44  ;;  %v628_v52 = vsel %vm500_vm8, %v436_v40, %v564_v48  ;;  %v629_v53 = vsel %vm501_vm9, %v437_v41, %v565_v49  ;;  %v441_v55 = vadd.f32 %v1569_v9, %v370_v46 }
  0x73   : > { %v1424_v56 = vpack.c.bf16 %v629_v53, %v628_v52  ;;  %v630_v57 = vsel %vm502_vm10, %v438_v42, %v566_v50  ;;  %v1279_v59 = vunpack.c.l.bf16 %v1471_v47  ;;  %vm504_vm12 = vcmp.ge.f32.partialorder %v440_v54, 0.0 }
  0x74   : > { %v631_v58 = vsel %vm503_vm11, %v439_v44, %v567_v51  ;;  %vm505_vm13 = vcmp.ge.f32.partialorder %v441_v55, 0.0  ;;  %v568_v61 = vmul.f32 0.1, %v440_v54  ;;  %v569_v62 = vmul.f32 0.1, %v441_v55 }
  0x75   : > { %v1429_v60 = vpack.c.bf16 %v631_v58, %v630_v57  ;;  %1499 = vst [vmem:[%s1592_s25 + $0xe0] sm:$0xff] %v1424_v56   ;;  %v1280_v63 = vunpack.c.h.bf16 %v1471_v47  ;;  %v371_v1 = vmul.f32 %v1279_v59, %v1560_v0 }
  0x76   : > { %v632_v2 = vsel %vm504_vm12, %v440_v54, %v568_v61  ;;  %v633_v3 = vsel %vm505_vm13, %v441_v55, %v569_v62 }
  0x77   : > { %1500 = vst [vmem:[%s1592_s25 + $0xe8] sm:$0xff] %v1429_v60   ;;  %v372_v4 = vmul.f32 %v1280_v63, %v1560_v0  ;;  %v442_v5 = vadd.f32 %v1569_v9, %v371_v1  ;;  %v1434_v6 = vpack.c.bf16 %v633_v3, %v632_v2 }
  0x79   : > { %v443_v7 = vadd.f32 %v1569_v9, %v372_v4  ;;  %vm506_vm14 = vcmp.ge.f32.partialorder %v442_v5, 0.0  ;;  %v570_v8 = vmul.f32 0.1, %v442_v5  ;;  %1501 = vst [vmem:[%s1592_s25 + $0xf0] sm:$0xff] %v1434_v6  }
  0x7b   : > { %vm507_vm15 = vcmp.ge.f32.partialorder %v443_v7, 0.0  ;;  %v571_v10 = vmul.f32 0.1, %v443_v7  ;;  %v634_v11 = vsel %vm506_vm14, %v442_v5, %v570_v8 }
  0x7d   : > { %v635_v12 = vsel %vm507_vm15, %v443_v7, %v571_v10 }
  0x7e   : > { %v1439_v13 = vpack.c.bf16 %v635_v12, %v634_v11 }
  0x80   : > { %1502 = vst [vmem:[%s1592_s25 + $0xf8] sm:$0xff] %v1439_v13  }
  0x81 PF: > { %s13_s12 = sadd.s32 1, %s1517_s12  }
  0x82   : > { %p10_p4 = scmp.ge.s32.totalorder %s13_s12, 18  }
  0x84   :  { %12 = sbr.rel (!%p10_p4) target bundleno = 1 (0x1), region = 62 }

</bundles_post_ra>
